<compile_context>
chip_gen: v7x
topology: tpu7x:2x2x1
jax: 0.10.0
libtpu: 0.0.40
codegen_flags: <defaults>
</compile_context>

<pallas_src>
import jax
import jax.numpy as jnp
from jax.experimental import pallas as pl
from jax.experimental.pallas import tpu as pltpu


def _feature_kernel(rgb_ref, lbl_ref, feat_ref):
    # rgb_ref : (3, tile_v)      feature-major, lane-dense
    # lbl_ref : (C, tile_v)
    # feat_ref: (3+C, tile_v)
    # (tanh(rgb) + 1) / 2  -- elementwise (EUP tanh + VPU)
    rgb = (jnp.tanh(rgb_ref[...]) + 1.0) * 0.5

    # stable softmax over the class axis, which is now the sublane axis (XLU reduce)
    lbl = lbl_ref[...]
    m = jnp.max(lbl, axis=0, keepdims=True)                 # (1, tile_v)
    e = jnp.exp(lbl - m)                                    # EUP
    denom = jnp.sum(e, axis=0, keepdims=True)               # (1, tile_v)
    p = e * pl.reciprocal(denom, approx=True)               # EUP reciprocal, VALU-free

    # write directly into sublane slices of the output ref (no in-kernel concat)
    feat_ref[0:3, :] = rgb
    feat_ref[3:, :] = p


def _choose_tile(V, max_tile=2048):
    """Pick a lane tile: multiple of 128, as large as possible, but keep >= 2 grid
    steps when V allows it (v7x: 2 TensorCores share the 'parallel' axis)."""
    half = pl.cdiv(V, 2 * 128) * 128      # ~V/2 rounded up to a lane multiple
    return max(128, min(max_tile, half))


def square_flat_grid_rgb_label_z_forward(vertices_rgb, vertices_label,
                                         vertices_xy, vertices_z,
                                         max_tile_v=2048):
    """vertices_rgb: (1, V, 3), vertices_label: (1, V, C),
       vertices_xy: (V, 2), vertices_z: (V, 1).
       Returns (features (V, 3+C), verts (V, 3)); batch replication
       (`mesh.extend(batch_size)`) is identical data per batch and is left as a
       lazy broadcast for the consumer."""
    rgb = jnp.squeeze(vertices_rgb, axis=0)      # (V, 3)
    lbl = jnp.squeeze(vertices_label, axis=0)    # (V, C)
    V = rgb.shape[0]
    C = lbl.shape[1]

    tile_v = _choose_tile(V, max_tile_v)
    V_pad = pl.cdiv(V, tile_v) * tile_v
    pad = V_pad - V
    if pad:
        # padded columns produce tanh(0)/2=0.5 and uniform softmax; sliced off below
        rgb = jnp.pad(rgb, ((0, pad), (0, 0)))
        lbl = jnp.pad(lbl, ((0, pad), (0, 0)))

    # wrapper-side layout plumbing: feature-major so V is on the 128-lane axis
    rgb_t = rgb.T                                # (3, V_pad)
    lbl_t = lbl.T                                # (C, V_pad)

    grid = (V_pad // tile_v,)

    feat_t = pl.pallas_call(
        _feature_kernel,
        out_shape=jax.ShapeDtypeStruct((3 + C, V_pad), jnp.float32),
        grid_spec=pltpu.PrefetchScalarGridSpec(
            num_scalar_prefetch=0,
            grid=grid,
            in_specs=[
                pl.BlockSpec((3, tile_v), lambda i: (0, i)),
                pl.BlockSpec((C, tile_v), lambda i: (0, i)),
            ],
            out_specs=pl.BlockSpec((3 + C, tile_v), lambda i: (0, i)),
        ),
        # even at tile_v=8192, double-buffered in+out VMEM is ~1.5 MiB for C=8,
        # well under the default scoped VMEM limit on v5e/v6e/v7x.
        compiler_params=pltpu.CompilerParams(
            dimension_semantics=("parallel",)),
    )(rgb_t, lbl_t)

    features = feat_t[:, :V].T                   # (V, 3+C) vertex-major for consumer

    # vertices = cat([xy, z], -1): pure copy, lane widths 2/1 -> keep it out of the
    # kernel (no tiny masked DMAs per grid step).
    verts = jnp.concatenate([vertices_xy, vertices_z], axis=-1)   # (V, 3)

    return features, verts


if __name__ == "__main__":
    key = jax.random.PRNGKey(0)
    k1, k2, k3 = jax.random.split(key, 3)

    # Small synthetic flat grid: 16 x 16 vertices -> V = 256, num_classes = 8
    grid_n = 16
    V = grid_n * grid_n
    num_classes = 8
    batch_size = 2

    # deterministic vertex grid (stand-in for createHiveFlatMesh + cut)
    xs = jnp.linspace(0.0, 10.0, grid_n, dtype=jnp.float32)
    ys = jnp.linspace(0.0, 10.0, grid_n, dtype=jnp.float32)
    gx, gy = jnp.meshgrid(xs, ys, indexing="ij")
    vertices_xy = jnp.stack([gx.reshape(-1), gy.reshape(-1)], axis=-1)   # (V, 2)

    # parameters (deterministic random; the module inits them as zeros, random keeps
    # the tanh/softmax compute non-trivial)
    vertices_rgb = 0.5 * jax.random.normal(k1, (1, V, 3), dtype=jnp.float32)
    vertices_label = jax.random.normal(k2, (1, V, num_classes), dtype=jnp.float32)
    vertices_z = 0.1 * jax.random.normal(k3, (V, 1), dtype=jnp.float32)

    features, verts = square_flat_grid_rgb_label_z_forward(
        vertices_rgb, vertices_label, vertices_xy, vertices_z)
    features = jax.block_until_ready(features)
    verts = jax.block_until_ready(verts)

    # mesh.extend(batch_size): identical data per batch -> lazy broadcast only
    features_b = jnp.broadcast_to(features[None], (batch_size, V, 3 + num_classes))
    verts_b = jnp.broadcast_to(verts[None], (batch_size, V, 3))

    # lightweight correctness check vs plain-JAX reference
    ref_rgb = (jnp.tanh(vertices_rgb[0]) + 1.0) / 2.0
    ref_lbl = jax.nn.softmax(vertices_label[0], axis=-1)
    ref_features = jnp.concatenate([ref_rgb, ref_lbl], axis=-1)
    ref_verts = jnp.concatenate([vertices_xy, vertices_z], axis=-1)
    assert features_b.shape == (batch_size, V, 3 + num_classes)
    assert verts_b.shape == (batch_size, V, 3)
    # approx=True reciprocal in the softmax -> slightly looser tolerance
    assert jnp.allclose(features, ref_features, atol=2e-3, rtol=2e-3)
    assert jnp.allclose(verts, ref_verts, atol=1e-6)

    print("KERNEL_OK")
</pallas_src>

<mosaic_0001>
module attributes {stable_mosaic.version = 11 : i64} {
  func.func @_feature_kernel(%arg0: i32, %arg1: memref<3x128xf32, #tpu.memory_space<vmem>>, %arg2: memref<8x128xf32, #tpu.memory_space<vmem>>, %arg3: memref<11x128xf32, #tpu.memory_space<vmem>>) attributes {dimension_semantics = [#tpu.dimension_semantics<parallel>], iteration_bounds = array<i64: 2>, scalar_prefetch = 0 : i64, scratch_operands = 0 : i64, tpu.core_type = #tpu.core_type<tc>, window_params = [{transform_indices = @transform_0, window_bounds = array<i64: 3, 128>}, {transform_indices = @transform_1, window_bounds = array<i64: 8, 128>}, {transform_indices = @transform_2, window_bounds = array<i64: 11, 128>}]} {
    %c0 = arith.constant 0 : index
    %c0_0 = arith.constant 0 : index
    %0 = vector.load %arg1[%c0, %c0_0] : memref<3x128xf32, #tpu.memory_space<vmem>>, vector<3x128xf32>
    %1 = math.tanh %0 : vector<3x128xf32>
    %cst = arith.constant 1.000000e+00 : f32
    %2 = vector.broadcast %cst : f32 to vector<3x128xf32>
    %3 = arith.addf %1, %2 : vector<3x128xf32>
    %cst_1 = arith.constant 5.000000e-01 : f32
    %4 = vector.broadcast %cst_1 : f32 to vector<3x128xf32>
    %5 = arith.mulf %3, %4 : vector<3x128xf32>
    %c0_2 = arith.constant 0 : index
    %c0_3 = arith.constant 0 : index
    %6 = vector.load %arg2[%c0_2, %c0_3] : memref<8x128xf32, #tpu.memory_space<vmem>>, vector<8x128xf32>
    %cst_4 = arith.constant dense<0xFF800000> : vector<128xf32>
    %7 = vector.multi_reduction <maximumf>, %6, %cst_4 [0] : vector<8x128xf32> to vector<128xf32>
    %8 = vector.shape_cast %7 : vector<128xf32> to vector<1x128xf32>
    %9 = vector.broadcast %8 : vector<1x128xf32> to vector<8x128xf32>
    %10 = arith.subf %6, %9 : vector<8x128xf32>
    %11 = math.exp %10 : vector<8x128xf32>
    %cst_5 = arith.constant dense<0.000000e+00> : vector<128xf32>
    %12 = vector.multi_reduction <add>, %11, %cst_5 [0] : vector<8x128xf32> to vector<128xf32>
    %13 = vector.shape_cast %12 : vector<128xf32> to vector<1x128xf32>
    %14 = tpu.reciprocal %13 {approx = true} : vector<1x128xf32> -> vector<1x128xf32>
    %15 = vector.broadcast %14 : vector<1x128xf32> to vector<8x128xf32>
    %16 = arith.mulf %11, %15 : vector<8x128xf32>
    %c0_6 = arith.constant 0 : index
    %c0_7 = arith.constant 0 : index
    %17 = vector.load %arg3[%c0_6, %c0_7] : memref<11x128xf32, #tpu.memory_space<vmem>>, vector<3x128xf32>
    tpu.vector_store %arg3[%c0_6, %c0_7], %5 {strides = array<i32>} : memref<11x128xf32, #tpu.memory_space<vmem>>, vector<3x128xf32>,
    %c3 = arith.constant 3 : index
    %c0_8 = arith.constant 0 : index
    %18 = vector.load %arg3[%c3, %c0_8] : memref<11x128xf32, #tpu.memory_space<vmem>>, vector<8x128xf32>
    tpu.vector_store %arg3[%c3, %c0_8], %16 {strides = array<i32>} : memref<11x128xf32, #tpu.memory_space<vmem>>, vector<8x128xf32>,
    return
  }
  func.func @transform_0(%arg0: i32) -> (i32, i32) {
    %c0_i32 = arith.constant 0 : i32
    %c0_i32_0 = arith.constant 0 : i32
    return %c0_i32, %arg0 : i32, i32
  }
  func.func @transform_1(%arg0: i32) -> (i32, i32) {
    %c0_i32 = arith.constant 0 : i32
    %c0_i32_0 = arith.constant 0 : i32
    return %c0_i32, %arg0 : i32, i32
  }
  func.func @transform_2(%arg0: i32) -> (i32, i32) {
    %c0_i32 = arith.constant 0 : i32
    %c0_i32_0 = arith.constant 0 : i32
    return %c0_i32, %arg0 : i32, i32
  }
}

</mosaic_0001>

<bundles_post_ra>
// kernel: tpu_custom_call.1
= control target key start
LH: loop header
LB: loop body
LE: loop exit
PB: predicated region body
PF: predicated region fallthrough
CT: control target
= control target key end

     0   :  { %7 = vsyncpa [#allocation3], 0  ;;  %s764_s0 = inlined_call_operand.hbm [shape: f32[3,256], index: 0, kind: input, shape index: {}]   ;;  %s765_s1 = inlined_call_operand.hbm [shape: f32[8,256], index: 1, kind: input, shape index: {}]   ;;  %s766_s2 = inlined_call_operand.hbm [shape: f32[11,256], index: 2, kind: output, shape index: {}]  }
   0x1   :  { %9 = vsyncpa [#allocation3 + $0x1], 0 }
   0x2   :  { %10 = vsyncpa [#allocation6], 0 }
   0x3   :  { %12 = vsyncpa [#allocation6 + $0x1], 0 }
   0x4   :  { %13 = vsyncpa [#allocation4], 0 }
   0x5   :  { %15 = vsyncpa [#allocation4 + $0x1], 0  ;;  %s557_s9 = smov 0   ;;  %s559_s10 = smov 0  }
   0x6   :  { %s561_s11 = smov 0   ;;  %s563_s12 = smov 0  }
   0x7 LB: > { %s578_s13 = sadd.s32 4294967295, %s534_s12   ;;  %s329_s14 = sadd.s32 4294967294, %s534_s12   ;;  %s534_s12 = sphi %s563_s12, %s785_s12   ;;  %s530_s11 = sphi %s561_s11, %s784_s11   ;;  %s526_s10 = sphi %s559_s10, %s783_s10   ;;  %s522_s9 = sphi %s557_s9, %s782_s9  }
   0x8   : > { %s582_s15 = sadd.s32 1, %s534_s12   ;;  %s28_s16 = sadd.s32 1, %s530_s11 }
   0x9   : > { %s25_s17 = ssub.s32 %s534_s12, %s582_s15  ;;  %p35_p0 = scmp.ne.s32.totalorder %s530_s11, %s526_s10 }
   0xa   : > { %p26_p1 = scmp.eq.s32.totalorder %s25_s17, 0  ;;  %p36_p2 = scmp.eq.s32.totalorder %s534_s12, 0 }
   0xb   : > { %p41_p3 = scmp.ne.s32.totalorder %s526_s10, %s522_s9  ;;  %p42_p4 = scmp.eq.s32.totalorder %s578_s13, 0 }
   0xc   : > { %s594_s18 = scalar_select %p26_p1, %s530_s11, %s28_s16  }
   0xd   : > { %p596_p5 = por %p36_p2, %p35_p0  ;;  %p600_p6 = por %p42_p4, %p41_p3 }
   0xe   : > { %p91_p7 = scmp.eq.s32.totalorder %s578_s13, 1  ;;  %p97_p8 = scmp.eq.s32.totalorder %s329_s14, 1 }
   0xf   : > { %s770_s20 = scalar_select %p600_p6, 1, 0 }
  0x10   : > { %p361_p10 = scmp.lt.s32.totalorder %s534_s12, 2  ;;  %p607_p11 = por %p91_p7, %p35_p0 }
  0x11   : > { %p611_p12 = por %p97_p8, %p41_p3  ;;  %s616_s23 = sand.u32 1, %s530_s11  }
  0x12   : > { %s771_s21 = scalar_select %p607_p11, 1, 0 }
  0x13   : > { %s772_s22 = scalar_select %p611_p12, 1, 0 }
  0x14   : > { %s333_s24 = sshll.u32 %s534_s12, 6  ;;  %s332_s25 = sshll.u32 %s616_s23, 2 }
  0x15   : > { %s623_s28 = scalar_lea.hbm %s764_s0, %s333_s24  ;;  %s121_s29 = scalar_lea.vmem [#allocation2], %s332_s25 }
  0x16   : > { %s128_s30 = sshll.u32 %s121_s29, 4  ;;  %p627_p13 = pnand %p361_p10, %p596_p5  ;;  %s631_s30 = int_to_ptr.vmem [resolvable:$true] %s128_s30 }
  0x17   : > { %s118_s4 = scalar_lea.sflag [#allocation3], %s616_s23  ;;  %s404_s5 = scalar_lea.hbm %s623_s28, 64 }
  0x18   : > { %p405_p2 = scmp.ne.s32.totalorder %s623_s28, %s404_s5  ;;  %p406_p3 = pneg %p627_p13 }
  0x19   : > { %s409_s8 = scalar_lea.hbm %s764_s0, 128  ;;  %p410_p5 = scmp.lt.u32.totalorder %s623_s28, %s764_s0 }
  0x1a   : > { %p407_p4 = pnand %p406_p3, %p405_p2  ;;  %p411_p8 = scmp.lt.u32.totalorder %s409_s8, %s404_s5 }
  0x1b   : > { %p413_p9 = scmp.lt.u32.totalorder %s404_s5, %s623_s28 }
  0x1c   : > { %p408_p7 = pneg %p407_p4  ;;  %p412_p10 = por %p411_p8, %p410_p5 }
  0x1e   : > { %p414_p0 = por %p413_p9, %p412_p10 }
  0x20   : > { %p415_p1 = pnand %p414_p0, %p408_p7 }
  0x22   : > { %418 = shalt.err (!%p415_p1)
}
  0x23   : > { %s419_s17 = scalar_lea.vmem %s631_s30, 64  ;;  %s536_s19 = smov [#allocation2]  }
  0x24   : > { %p420_p2 = scmp.ne.s32.totalorder %s631_s30, %s419_s17  ;;  %s424_s24 = sshll.u32 %s536_s19, 4  ;;  %s425_s24 = int_to_ptr.vmem [resolvable:$false] %s424_s24 }
  0x25   : > { %s426_s25 = scalar_lea.vmem %s425_s24, 128  ;;  %p427_p11 = scmp.lt.s32.totalorder %s631_s30, %s425_s24 }
  0x26   : > { %p422_p4 = pnand %p420_p2, %p406_p3  ;;  %p428_p5 = scmp.lt.s32.totalorder %s426_s25, %s419_s17 }
  0x28   : > { %p423_p12 = pneg %p422_p4  ;;  %p429_p8 = por %p428_p5, %p427_p11 }
  0x2a   : > { %p430_p9 = pnand %p429_p8, %p423_p12 }
  0x2c   : > { %433 = shalt.err (!%p430_p9)
}
  0x2d   : > { %353 = dma.hbm_to_vmem [thread:$0]  (!%p627_p13), %s623_s28, 64, %s631_s30, %s118_s4  }
  0x2e   : > { %p774_p0 = scmp.lt.s32.totalorder %s534_s12, 3  ;;  %p775_p1 = scmp.ge.s32.totalorder %s534_s12, 1 }
  0x2f   : > { %s334_s27 = sshll.u32 %s616_s23, 3  ;;  %s335_s29 = sshll.u32 %s534_s12, 7 }
  0x30   : > { %p665_p7 = pnand %p775_p1, %p774_p0  ;;  %s674_s7 = scalar_lea.hbm %s765_s1, %s335_s29 }
  0x31   : > { %s139_s8 = scalar_lea.vmem [#allocation5], %s334_s27  ;;  %s136_s28 = scalar_lea.sflag [#allocation6], %s616_s23 }
  0x32   : > { %s776_s26 = scalar_select %p665_p7, 1, 0 }
  0x33   : > { %s146_s14 = sshll.u32 %s139_s8, 4  ;;  %s434_s30 = scalar_lea.hbm %s674_s7, 128  ;;  %s147_s14 = int_to_ptr.vmem [resolvable:$true] %s146_s14 }
  0x34   : > { %p435_p11 = scmp.ne.s32.totalorder %s674_s7, %s434_s30  ;;  %s439_s17 = scalar_lea.hbm %s765_s1, 256 }
  0x35   : > { %p440_p2 = scmp.lt.u32.totalorder %s674_s7, %s765_s1  ;;  %p441_p4 = scmp.lt.u32.totalorder %s439_s17, %s434_s30 }
  0x36   : > { %p437_p12 = pnand %p435_p11, %p406_p3  ;;  %p443_p8 = scmp.lt.u32.totalorder %s434_s30, %s674_s7 }
  0x37   : > { %p442_p5 = por %p441_p4, %p440_p2 }
  0x38   : > { %p438_p10 = pneg %p437_p12 }
  0x39   : > { %p444_p9 = por %p443_p8, %p442_p5 }
  0x3b   : > { %p445_p0 = pnand %p444_p9, %p438_p10 }
  0x3d   : > { %448 = shalt.err (!%p445_p0)
}
  0x3e   : > { %s449_s23 = scalar_lea.vmem %s147_s14, 128  ;;  %s537_s25 = smov [#allocation5]  }
  0x3f   : > { %p450_p1 = scmp.ne.s32.totalorder %s147_s14, %s449_s23  ;;  %s454_s27 = sshll.u32 %s537_s25, 4  ;;  %s455_s27 = int_to_ptr.vmem [resolvable:$false] %s454_s27 }
  0x40   : > { %s456_s29 = scalar_lea.vmem %s455_s27, 256  ;;  %p457_p6 = scmp.lt.s32.totalorder %s147_s14, %s455_s27 }
  0x41   : > { %p452_p11 = pnand %p450_p1, %p406_p3  ;;  %p458_p7 = scmp.lt.s32.totalorder %s456_s29, %s449_s23 }
  0x43   : > { %p453_p12 = pneg %p452_p11  ;;  %p459_p2 = por %p458_p7, %p457_p6 }
  0x45   : > { %p460_p4 = pnand %p459_p2, %p453_p12 }
  0x47   : > { %463 = shalt.err (!%p460_p4)
}
  0x48   : > { %356 = dma.hbm_to_vmem [thread:$0]  (!%p627_p13), %s674_s7, 128, %s147_s14, %s136_s28  }
  0x49   : > { %p777_p10 = scmp.ne.s32.totalorder %s776_s26, 0 }
  0x4a   : > { %s699_s5 = sand.u32 (!%p777_p10), 1, %s526_s10   ;;  %p778_p3 = scmp.ne.s32.totalorder (!%p777_p10), %s770_s20, 0 }
  0x4b   : > { %155 = sbr.rel (%p777_p10) target bundleno = 155 (0x9b), region = 28  ;;  %s337_s6 = sshll.u32 (!%p777_p10), %s699_s5, 2 }
  0x4c   : > { %s158_s8 = scalar_lea.sflag (!%p777_p10), [#allocation3], %s699_s5  ;;  %s161_s30 = scalar_lea.vmem (!%p777_p10), [#allocation2], %s337_s6 }
  0x52   : > { %509 = dma.done.wait (%p778_p3), %s158_s8, 64  }
  0x53   : > { %511 = vsyncadd (%p778_p3), %s158_s8, 4294967232  ;;  %s338_s3 = sshll.u32 %s699_s5, 3  ;;  %s167_s26 = scalar_lea.sflag [#allocation6], %s699_s5 }
  0x54   : > { %s170_s7 = scalar_lea.vmem [#allocation5], %s338_s3 }
  0x55   : > { %513 = dma.done.wait (%p778_p3), %s167_s26, 128  }
  0x56   : > { %515 = vsyncadd (%p778_p3), %s167_s26, 4294967168  ;;  %v196_v0 = vld [vmem:[%s161_s30] sm:$0x7]  ;;  %v200_v1 = vld [vmem:[%s170_s7] sm:$0xff]  ;;  %s339_s14 = sshll.u32 %s699_s5, 4  ;;  %s341_s20 = sshll.u32 %s578_s13, 7 }
  0x57   : > { %398 = vtanh.f32 %v196_v0  ;;  %v201_v2 = vrot.slane %v200_v1, 4  ;;  %s195_s28 = scalar_lea.vmem [#allocation7], %s339_s14  ;;  %s718_s19 = scalar_lea.hbm %s766_s2, %s341_s20 }
  0x58   : > { %s233_s4 = sshll.u32 %s195_s28, 4  ;;  %s221_s24 = scalar_lea.sflag [#allocation4], %s699_s5  ;;  %s720_s4 = int_to_ptr.vmem [resolvable:$true] %s233_s4 }
  0x59   : > { %v202_v3 = vmax.f32 %v200_v1, %v201_v2  ;;  %s464_s23 = scalar_lea.vmem %s720_s4, 256  ;;  %p779_p13 = scmp.ne.s32.totalorder %s771_s21, 0 }
  0x5a   : > { %p465_p6 = scmp.ne.s32.totalorder %s720_s4, %s464_s23  ;;  %s538_s13 = smov [#allocation7]  }
  0x5b   : > { %v203_v4 = vrot.slane %v202_v3, 2  ;;  %s468_s25 = sshll.u32 %s538_s13, 4  ;;  %s469_s25 = int_to_ptr.vmem [resolvable:$false] %s468_s25 }
  0x5c   : > { %p466_p7 = pnand %p465_p6, %p779_p13  ;;  %s470_s27 = scalar_lea.vmem %s469_s25, 512 }
  0x5d   : > { %v204_v5 = vmax.f32 %v202_v3, %v203_v4  ;;  %p471_p8 = scmp.lt.s32.totalorder %s720_s4, %s469_s25  ;;  %p472_p9 = scmp.lt.s32.totalorder %s470_s27, %s464_s23 }
  0x5e   : > { %p467_p5 = pneg %p466_p7 }
  0x5f   : > { %v205_v6 = vrot.slane %v204_v5, 1  ;;  %p473_p0 = por %p472_p9, %p471_p8 }
  0x61   : > { %v399_v7 = vpop.eup %398  ;;  %v206_v8 = vmax.f32 %v204_v5, %v205_v6  ;;  %p474_p1 = pnand %p473_p0, %p467_p5 }
  0x62   : > { %v198_v9 = vadd.f32 1.0, %v399_v7 }
  0x63   : > { %v207_v10 = vsub.f32 %v200_v1, %v206_v8 }
  0x64   : > { %v199_v11 = vmul.f32 0.5, %v198_v9 }
  0x65   : > { %v208_v12 = vmul.f32 1.442695, %v207_v10 }
  0x66   : > { %218 = vst [vmem:[%s195_s28] sm:$0x7] %v199_v11 }
  0x67   : > { %400 = vpow2.f32 %v208_v12 }
  0x71   : > { %v401_v13 = vpop.eup %400 }
  0x72   : > { %v210_v14 = vrot.slane %v401_v13, 4 }
  0x74   : > { %v211_v15 = vadd.f32 %v401_v13, %v210_v14 }
  0x76   : > { %v212_v16 = vrot.slane %v211_v15, 2 }
  0x78   : > { %v213_v17 = vadd.f32 %v212_v16, %v211_v15 }
  0x7a   : > { %v214_v18 = vrot.slane %v213_v17, 1 }
  0x7c   : > { %v215_v19 = vadd.f32 %v214_v18, %v213_v17 }
  0x7e   : > { %402 = vrcp.f32 %v215_v19 }
  0x88   : > { %v403_v20 = vpop.eup %402 }
  0x89   : > { %v217_v21 = vmul.f32 %v403_v20, %v401_v13 }
  0x8b   : > { %219 = vst [vmem:[%s195_s28 + $0x3] sm:$0xff] %v217_v21 }
  0x8c   : > { %477 = shalt.err (!%p474_p1)
}
  0x8d   : > { %s478_s29 = scalar_lea.hbm %s718_s19, 256  ;;  %s482_s30 = scalar_lea.hbm %s766_s2, 512 }
  0x8e   : > { %p479_p11 = scmp.ne.s32.totalorder %s718_s19, %s478_s29  ;;  %p483_p4 = scmp.lt.u32.totalorder %s718_s19, %s766_s2 }
  0x8f   : > { %p484_p10 = scmp.lt.u32.totalorder %s482_s30, %s478_s29  ;;  %p486_p6 = scmp.lt.u32.totalorder %s478_s29, %s718_s19 }
  0x90   : > { %p480_p12 = pnand %p479_p11, %p779_p13 }
  0x91   : > { %p485_p3 = por %p484_p10, %p483_p4 }
  0x92   : > { %p481_p2 = pneg %p480_p12 }
  0x93   : > { %p487_p7 = por %p486_p6, %p485_p3 }
  0x95   : > { %p488_p5 = pnand %p487_p7, %p481_p2 }
  0x97   : > { %491 = shalt.err (!%p488_p5)
}
  0x98   : > { %s539_s7 = smov 128   ;;  %s540_s14 = smov 256  }
  0x99   : > { %s541_s28 = smov 8  }
  0x9a   : > { %348 = dma.vmem_to_hbm [thread:$0]  (%p779_p13), %s720_s4, 256, %s718_s19, %s221_s24, %s539_s7, %s540_s14, %s541_s28  }
  0x9b PF: > { %s248_s20 = sand.u32 1, %s522_s9   ;;  %p780_p8 = scmp.ne.s32.totalorder %s772_s22, 0 }
  0x9c   : > { %p781_p9 = scmp.ge.s32.totalorder %s534_s12, 2  ;;  %s249_s16 = scalar_lea.sflag [#allocation4], %s248_s20 }
  0x9e   : > { %p358_p0 = pnand %p781_p9, %p780_p8 }
  0xa0   : > { %517 = dma.done.wait (!%p358_p0), %s249_s16, 256  }
  0xa1   : > { %519 = vsyncadd (!%p358_p0), %s249_s16, 4294967040  ;;  %p18_p1 = scmp.ge.s32.totalorder %s582_s15, 4   ;;  %s782_s9 = smov %s526_s10 }
  0xa2   : > { %s783_s10 = smov %s530_s11  ;;  %s784_s11 = smov %s594_s18 }
  0xa3   : > { %s785_s12 = smov %s582_s15  ;;  %20 = sbr.rel (!%p18_p1) target bundleno = 7 (0x7), region = 86 }
  0xaa   :  { %254 = vsyncpa [#allocation3], 1 }
  0xab   :  { %256 = vsyncpa [#allocation3 + $0x1], 1 }
  0xac   :  { %257 = vsyncpa [#allocation6], 1 }
  0xad   :  { %259 = vsyncpa [#allocation6 + $0x1], 1 }
  0xae   :  { %260 = vsyncpa [#allocation4], 1 }
  0xaf   :  { %262 = vsyncpa [#allocation4 + $0x1], 1 }

</bundles_post_ra>
